<compile_context>
chip_gen: v6e
topology: v6e:2x2x1
jax: 0.10.0
libtpu: 0.0.40
codegen_flags: <defaults>
</compile_context>

<pallas_src>
import jax
import jax.numpy as jnp
from jax.experimental import pallas as pl
from jax.experimental.pallas import tpu as pltpu  # noqa: F401  (future tiling/megacore work)


# ---------------------------------------------------------------------------
# Fused decoder kernel (all LSTM layers + Linear head, wavefront recurrence)
# ---------------------------------------------------------------------------
def _make_decoder_kernel(num_layers: int, seq_len: int, batch: int, hidden: int):
    T, B, H, L = seq_len, batch, hidden, num_layers

    def kernel(*refs):
        n_in = 3 + 3 * L + 2
        x_ref, h0_ref, c0_ref = refs[0:3]              # (T*B,Fin), (L,B,H), (L,B,H)
        layer_refs = refs[3:3 + 3 * L]                 # per layer: wih_t, whh_t, bias
        head_w_ref, head_b_ref = refs[3 + 3 * L:n_in]  # (H,Fpad), (1,Fpad)
        y_ref, hN_ref, cN_ref = refs[n_in:n_in + 3]

        # ---- hoisted constants for the single-sigmoid gate trick -------------
        # gates packed (i | f | g | o) along the 4H lane axis; tanh(x)=2*sig(2x)-1
        lane = jax.lax.broadcasted_iota(jnp.int32, (B, 4 * H), 1)
        g_mask = jnp.logical_and(lane >= 2 * H, lane < 3 * H)          # (B,4H) bool
        gate_scale = jnp.where(g_mask, 2.0, 1.0).astype(jnp.float32)   # (B,4H)

        # ---- hoisted weight loads / broadcast biases --------------------------
        wih = [layer_refs[3 * l + 0][...] for l in range(L)]           # (Fin_l,4H)
        whh = [layer_refs[3 * l + 1][...] for l in range(L)]           # (H,4H)
        bias = [jnp.broadcast_to(layer_refs[3 * l + 2][...], (B, 4 * H))
                for l in range(L)]                                     # (B,4H)

        # ---- layer-0 input projection hoisted over the whole sequence --------
        # (no recurrence dependence); stays a value, sliced statically per step.
        gx0 = (jnp.dot(x_ref[...], wih[0], preferred_element_type=jnp.float32)
               + layer_refs[2][...])                                   # (T*B,4H)

        # TODO(synk): inter-layer dropout (dropout_rate > 0, training mode) not
        #             applied; matches eval-mode nn.LSTM semantics.

        h = [h0_ref[l] for l in range(L)]                              # (B,H) each
        c = [c0_ref[l] for l in range(L)]

        y_rows = []
        for t in range(T):                     # static unroll; wavefront ordering:
            x_prev = None                      # layer l step t needs only layer
            for l in range(L):                 # l-1 step t and layer l step t-1.
                if l == 0:
                    zx = gx0[t * B:(t + 1) * B, :]                     # (B,4H)
                else:
                    zx = (jnp.dot(x_prev, wih[l],
                                  preferred_element_type=jnp.float32)
                          + bias[l])
                z = zx + jnp.dot(h[l], whh[l],
                                 preferred_element_type=jnp.float32)   # (B,4H)
                # one full-width sigmoid; tanh on g lanes via 2*sig(2x)-1
                s = jax.nn.sigmoid(z * gate_scale)
                act = jnp.where(g_mask, 2.0 * s - 1.0, s)
                i_g = act[:, 0 * H:1 * H]
                f_g = act[:, 1 * H:2 * H]
                g_g = act[:, 2 * H:3 * H]
                o_g = act[:, 3 * H:4 * H]
                c[l] = f_g * c[l] + i_g * g_g
                h[l] = o_g * jnp.tanh(c[l])
                x_prev = h[l]
            y_rows.append(h[L - 1])

        # ---- final states (tiny epilogue stores) ------------------------------
        for l in range(L):
            hN_ref[l] = h[l]
            cN_ref[l] = c[l]

        # ---- Linear head over the whole sequence, lane-dense padded output ----
        seq = jnp.concatenate(y_rows, axis=0)                          # (T*B,H)
        y_ref[...] = (jnp.dot(seq, head_w_ref[...],
                              preferred_element_type=jnp.float32)
                      + head_b_ref[...])

    return kernel


def _full_spec(shape):
    zeros = (0,) * len(shape)
    return pl.BlockSpec(shape, lambda: zeros)


# ---------------------------------------------------------------------------
# Public wrapper (matches Decoder.forward: batch_first input/output)
# ---------------------------------------------------------------------------
@jax.jit
def decoder_forward(params, decoder_input, hidden_state):
    """decoder_input: (B, T, F_target); hidden_state: (h0, c0), each (L, B, H)."""
    h0_all, c0_all = hidden_state
    x = jnp.asarray(decoder_input, jnp.float32)           # (B, T, Fin)
    B, T, Fin = x.shape
    h0 = jnp.asarray(h0_all, jnp.float32)                 # (L, B, H)
    c0 = jnp.asarray(c0_all, jnp.float32)
    L, _, H = h0.shape

    # Time-major flattened rows (row = t*B + b): whole-sequence layer-0 input
    # projection is one 2-D matmul and each step's rows are contiguous.
    x2d = jnp.transpose(x, (1, 0, 2)).reshape(T * B, Fin)

    weight_args = []
    for p in params["lstm"]:
        weight_args.append(jnp.asarray(p["weight_ih"], jnp.float32).T)   # (Fin/H,4H)
        weight_args.append(jnp.asarray(p["weight_hh"], jnp.float32).T)   # (H,4H)
        weight_args.append((jnp.asarray(p["bias_ih"], jnp.float32)
                            + jnp.asarray(p["bias_hh"], jnp.float32)
                            ).reshape(1, 4 * H))

    w_lin = jnp.asarray(params["linear"]["weight"], jnp.float32)         # (Fout,H)
    b_lin = jnp.asarray(params["linear"]["bias"], jnp.float32)           # (Fout,)
    Fout = w_lin.shape[0]
    Fpad = ((Fout + 127) // 128) * 128        # lane-dense head-output width
    w_head = jnp.zeros((H, Fpad), jnp.float32).at[:, :Fout].set(w_lin.T)
    b_head = jnp.zeros((1, Fpad), jnp.float32).at[:, :Fout].set(b_lin[None, :])

    args = (x2d, h0, c0, *weight_args, w_head, b_head)
    in_specs = [_full_spec(a.shape) for a in args]

    out_shape = (
        jax.ShapeDtypeStruct((T * B, Fpad), jnp.float32),   # padded head output
        jax.ShapeDtypeStruct((L, B, H), jnp.float32),       # final hidden state
        jax.ShapeDtypeStruct((L, B, H), jnp.float32),       # final cell state
    )
    out_specs = (
        _full_spec((T * B, Fpad)),
        _full_spec((L, B, H)),
        _full_spec((L, B, H)),
    )

    y2d, hN, cN = pl.pallas_call(
        _make_decoder_kernel(L, T, B, H),
        out_shape=out_shape,
        in_specs=in_specs,
        out_specs=out_specs,
    )(*args)

    # Strip lane padding, back to batch_first (B, T, Fout).
    y = y2d[:, :Fout].reshape(T, B, Fout).transpose(1, 0, 2)
    return y, (hN, cN)


# ---------------------------------------------------------------------------
# Pure-JAX reference (mirrors torch.nn.LSTM + nn.Linear semantics)
# ---------------------------------------------------------------------------
def decoder_reference(params, decoder_input, hidden_state):
    h0_all, c0_all = hidden_state
    x = jnp.transpose(jnp.asarray(decoder_input, jnp.float32), (1, 0, 2))  # (T,B,F)
    h_finals, c_finals = [], []
    layer_in = x
    for l, p in enumerate(params["lstm"]):
        wih_t = p["weight_ih"].T
        whh_t = p["weight_hh"].T
        bias = p["bias_ih"] + p["bias_hh"]
        H = p["weight_hh"].shape[1]

        def step(carry, xt):
            h, c = carry
            gates = xt @ wih_t + h @ whh_t + bias
            i = jax.nn.sigmoid(gates[:, 0 * H:1 * H])
            f = jax.nn.sigmoid(gates[:, 1 * H:2 * H])
            g = jnp.tanh(gates[:, 2 * H:3 * H])
            o = jax.nn.sigmoid(gates[:, 3 * H:4 * H])
            c_new = f * c + i * g
            h_new = o * jnp.tanh(c_new)
            return (h_new, c_new), h_new

        (hN, cN), outs = jax.lax.scan(step, (h0_all[l], c0_all[l]), layer_in)
        h_finals.append(hN)
        c_finals.append(cN)
        layer_in = outs
    y = layer_in @ params["linear"]["weight"].T + params["linear"]["bias"]
    return (jnp.transpose(y, (1, 0, 2)),
            (jnp.stack(h_finals), jnp.stack(c_finals)))


# ---------------------------------------------------------------------------
# Deterministic parameter init (shapes follow nn.LSTM / nn.Linear)
# ---------------------------------------------------------------------------
def init_decoder_params(key, hidden_state_dim, num_target_features,
                        num_recurrent_layers=1):
    params = {"lstm": [], "linear": {}}
    H, F = hidden_state_dim, num_target_features
    scale = 1.0 / jnp.sqrt(H)
    for l in range(num_recurrent_layers):
        in_dim = F if l == 0 else H
        key, k1, k2, k3, k4 = jax.random.split(key, 5)
        params["lstm"].append({
            "weight_ih": jax.random.uniform(k1, (4 * H, in_dim), jnp.float32,
                                            -scale, scale),
            "weight_hh": jax.random.uniform(k2, (4 * H, H), jnp.float32,
                                            -scale, scale),
            "bias_ih": jax.random.uniform(k3, (4 * H,), jnp.float32,
                                          -scale, scale),
            "bias_hh": jax.random.uniform(k4, (4 * H,), jnp.float32,
                                          -scale, scale),
        })
    key, k1, k2 = jax.random.split(key, 3)
    params["linear"]["weight"] = jax.random.uniform(k1, (F, H), jnp.float32,
                                                    -scale, scale)
    params["linear"]["bias"] = jax.random.uniform(k2, (F,), jnp.float32,
                                                  -scale, scale)
    return params


# ---------------------------------------------------------------------------
if __name__ == "__main__":
    B, T = 2, 8                     # batch, time steps
    hidden_state_dim = 32
    num_target_features = 4

    for num_recurrent_layers in (1, 2):   # exercise single- and multi-layer paths
        key = jax.random.PRNGKey(0)
        kp, kx, kh, kc = jax.random.split(key, 4)

        params = init_decoder_params(kp, hidden_state_dim, num_target_features,
                                     num_recurrent_layers)
        decoder_input = jax.random.normal(kx, (B, T, num_target_features),
                                          jnp.float32)
        h0 = jax.random.normal(kh, (num_recurrent_layers, B, hidden_state_dim),
                               jnp.float32)
        c0 = jax.random.normal(kc, (num_recurrent_layers, B, hidden_state_dim),
                               jnp.float32)

        out, (hN, cN) = decoder_forward(params, decoder_input, (h0, c0))
        jax.block_until_ready((out, hN, cN))

        ref_out, (ref_hN, ref_cN) = decoder_reference(params, decoder_input,
                                                      (h0, c0))
        assert out.shape == (B, T, num_target_features)
        assert hN.shape == (num_recurrent_layers, B, hidden_state_dim)
        assert cN.shape == (num_recurrent_layers, B, hidden_state_dim)
        # Tolerance absorbs MXU default-precision / accumulation-order deltas
        # (and tanh-via-sigmoid rounding) vs the XLA reference.
        assert jnp.allclose(out, ref_out, atol=1e-4, rtol=1e-4), \
            float(jnp.max(jnp.abs(out - ref_out)))
        assert jnp.allclose(hN, ref_hN, atol=1e-4, rtol=1e-4)
        assert jnp.allclose(cN, ref_cN, atol=1e-4, rtol=1e-4)

    print("KERNEL_OK")
</pallas_src>

<mosaic_0001>
module attributes {stable_mosaic.version = 11 : i64} {
  func.func @kernel(%arg0: memref<16x4xf32, #tpu.memory_space<vmem>>, %arg1: memref<1x2x32xf32, #tpu.memory_space<vmem>>, %arg2: memref<1x2x32xf32, #tpu.memory_space<vmem>>, %arg3: memref<4x128xf32, #tpu.memory_space<vmem>>, %arg4: memref<32x128xf32, #tpu.memory_space<vmem>>, %arg5: memref<1x128xf32, #tpu.memory_space<vmem>>, %arg6: memref<32x128xf32, #tpu.memory_space<vmem>>, %arg7: memref<1x128xf32, #tpu.memory_space<vmem>>, %arg8: memref<16x128xf32, #tpu.memory_space<vmem>>, %arg9: memref<1x2x32xf32, #tpu.memory_space<vmem>>, %arg10: memref<1x2x32xf32, #tpu.memory_space<vmem>>) attributes {dimension_semantics = [], scalar_prefetch = 0 : i64, scratch_operands = 0 : i64, tpu.core_type = #tpu.core_type<tc>} {
    %0 = tpu.iota {dimensions = array<i32: 1>} : vector<2x128xi32>
    %c64_i32 = arith.constant 64 : i32
    %1 = vector.broadcast %c64_i32 : i32 to vector<2x128xi32>
    %2 = arith.cmpi sge, %0, %1 : vector<2x128xi32>
    %c96_i32 = arith.constant 96 : i32
    %3 = vector.broadcast %c96_i32 : i32 to vector<2x128xi32>
    %4 = arith.cmpi slt, %0, %3 : vector<2x128xi32>
    %5 = arith.andi %2, %4 : vector<2x128xi1>
    %cst = arith.constant 2.000000e+00 : f32
    %cst_0 = arith.constant 1.000000e+00 : f32
    %6 = vector.broadcast %cst : f32 to vector<2x128xf32>
    %7 = vector.broadcast %cst_0 : f32 to vector<2x128xf32>
    %8 = arith.select %5, %6, %7 : vector<2x128xi1>, vector<2x128xf32>
    %c0 = arith.constant 0 : index
    %c0_1 = arith.constant 0 : index
    %9 = vector.load %arg3[%c0, %c0_1] : memref<4x128xf32, #tpu.memory_space<vmem>>, vector<4x128xf32>
    %c0_2 = arith.constant 0 : index
    %c0_3 = arith.constant 0 : index
    %10 = vector.load %arg4[%c0_2, %c0_3] : memref<32x128xf32, #tpu.memory_space<vmem>>, vector<32x128xf32>
    %c0_4 = arith.constant 0 : index
    %c0_5 = arith.constant 0 : index
    %11 = vector.load %arg0[%c0_4, %c0_5] : memref<16x4xf32, #tpu.memory_space<vmem>>, vector<16x4xf32>
    %cst_6 = arith.constant dense<0.000000e+00> : vector<16x128xf32>
    %12 = tpu.matmul %11, %9, %cst_6 {dimension_numbers = #tpu.dot_dimension_numbers<[1], [0], [0], [1], [0, 0, 1, 1], [], []>} : vector<16x4xf32>, vector<4x128xf32>, vector<16x128xf32> -> vector<16x128xf32>
    %c0_7 = arith.constant 0 : index
    %c0_8 = arith.constant 0 : index
    %13 = vector.load %arg5[%c0_7, %c0_8] : memref<1x128xf32, #tpu.memory_space<vmem>>, vector<1x128xf32>
    %14 = vector.broadcast %13 : vector<1x128xf32> to vector<16x128xf32>
    %15 = arith.addf %12, %14 : vector<16x128xf32>
    %c0_9 = arith.constant 0 : index
    %c0_10 = arith.constant 0 : index
    %c0_11 = arith.constant 0 : index
    %16 = vector.load %arg1[%c0_9, %c0_10, %c0_11] : memref<1x2x32xf32, #tpu.memory_space<vmem>>, vector<1x2x32xf32>
    %17 = vector.shape_cast %16 : vector<1x2x32xf32> to vector<2x32xf32>
    %c0_12 = arith.constant 0 : index
    %c0_13 = arith.constant 0 : index
    %c0_14 = arith.constant 0 : index
    %18 = vector.load %arg2[%c0_12, %c0_13, %c0_14] : memref<1x2x32xf32, #tpu.memory_space<vmem>>, vector<1x2x32xf32>
    %19 = vector.shape_cast %18 : vector<1x2x32xf32> to vector<2x32xf32>
    %20 = vector.extract_strided_slice %15 {offsets = [0, 0], sizes = [2, 128], strides = [1, 1]} : vector<16x128xf32> to vector<2x128xf32>
    %cst_15 = arith.constant dense<0.000000e+00> : vector<2x128xf32>
    %21 = tpu.matmul %17, %10, %cst_15 {dimension_numbers = #tpu.dot_dimension_numbers<[1], [0], [0], [1], [0, 0, 1, 1], [], []>} : vector<2x32xf32>, vector<32x128xf32>, vector<2x128xf32> -> vector<2x128xf32>
    %22 = arith.addf %20, %21 : vector<2x128xf32>
    %23 = arith.mulf %22, %8 : vector<2x128xf32>
    %24 = arith.negf %23 : vector<2x128xf32>
    %25 = math.exp %24 : vector<2x128xf32>
    %cst_16 = arith.constant 1.000000e+00 : f32
    %26 = vector.broadcast %cst_16 : f32 to vector<2x128xf32>
    %27 = arith.addf %26, %25 : vector<2x128xf32>
    %28 = arith.divf %26, %27 : vector<2x128xf32>
    %cst_17 = arith.constant 2.000000e+00 : f32
    %29 = vector.broadcast %cst_17 : f32 to vector<2x128xf32>
    %30 = arith.mulf %29, %28 : vector<2x128xf32>
    %cst_18 = arith.constant 1.000000e+00 : f32
    %31 = vector.broadcast %cst_18 : f32 to vector<2x128xf32>
    %32 = arith.subf %30, %31 : vector<2x128xf32>
    %33 = arith.select %5, %32, %28 : vector<2x128xi1>, vector<2x128xf32>
    %34 = vector.extract_strided_slice %33 {offsets = [0, 0], sizes = [2, 32], strides = [1, 1]} : vector<2x128xf32> to vector<2x32xf32>
    %35 = vector.extract_strided_slice %33 {offsets = [0, 32], sizes = [2, 32], strides = [1, 1]} : vector<2x128xf32> to vector<2x32xf32>
    %36 = vector.extract_strided_slice %33 {offsets = [0, 64], sizes = [2, 32], strides = [1, 1]} : vector<2x128xf32> to vector<2x32xf32>
    %37 = vector.extract_strided_slice %33 {offsets = [0, 96], sizes = [2, 32], strides = [1, 1]} : vector<2x128xf32> to vector<2x32xf32>
    %38 = arith.mulf %35, %19 : vector<2x32xf32>
    %39 = arith.mulf %34, %36 : vector<2x32xf32>
    %40 = arith.addf %38, %39 : vector<2x32xf32>
    %41 = math.tanh %40 : vector<2x32xf32>
    %42 = arith.mulf %37, %41 : vector<2x32xf32>
    %43 = vector.extract_strided_slice %15 {offsets = [2, 0], sizes = [2, 128], strides = [1, 1]} : vector<16x128xf32> to vector<2x128xf32>
    %cst_19 = arith.constant dense<0.000000e+00> : vector<2x128xf32>
    %44 = tpu.matmul %42, %10, %cst_19 {dimension_numbers = #tpu.dot_dimension_numbers<[1], [0], [0], [1], [0, 0, 1, 1], [], []>} : vector<2x32xf32>, vector<32x128xf32>, vector<2x128xf32> -> vector<2x128xf32>
    %45 = arith.addf %43, %44 : vector<2x128xf32>
    %46 = arith.mulf %45, %8 : vector<2x128xf32>
    %47 = arith.negf %46 : vector<2x128xf32>
    %48 = math.exp %47 : vector<2x128xf32>
    %cst_20 = arith.constant 1.000000e+00 : f32
    %49 = vector.broadcast %cst_20 : f32 to vector<2x128xf32>
    %50 = arith.addf %49, %48 : vector<2x128xf32>
    %51 = arith.divf %49, %50 : vector<2x128xf32>
    %cst_21 = arith.constant 2.000000e+00 : f32
    %52 = vector.broadcast %cst_21 : f32 to vector<2x128xf32>
    %53 = arith.mulf %52, %51 : vector<2x128xf32>
    %cst_22 = arith.constant 1.000000e+00 : f32
    %54 = vector.broadcast %cst_22 : f32 to vector<2x128xf32>
    %55 = arith.subf %53, %54 : vector<2x128xf32>
    %56 = arith.select %5, %55, %51 : vector<2x128xi1>, vector<2x128xf32>
    %57 = vector.extract_strided_slice %56 {offsets = [0, 0], sizes = [2, 32], strides = [1, 1]} : vector<2x128xf32> to vector<2x32xf32>
    %58 = vector.extract_strided_slice %56 {offsets = [0, 32], sizes = [2, 32], strides = [1, 1]} : vector<2x128xf32> to vector<2x32xf32>
    %59 = vector.extract_strided_slice %56 {offsets = [0, 64], sizes = [2, 32], strides = [1, 1]} : vector<2x128xf32> to vector<2x32xf32>
    %60 = vector.extract_strided_slice %56 {offsets = [0, 96], sizes = [2, 32], strides = [1, 1]} : vector<2x128xf32> to vector<2x32xf32>
    %61 = arith.mulf %58, %40 : vector<2x32xf32>
    %62 = arith.mulf %57, %59 : vector<2x32xf32>
    %63 = arith.addf %61, %62 : vector<2x32xf32>
    %64 = math.tanh %63 : vector<2x32xf32>
    %65 = arith.mulf %60, %64 : vector<2x32xf32>
    %66 = vector.extract_strided_slice %15 {offsets = [4, 0], sizes = [2, 128], strides = [1, 1]} : vector<16x128xf32> to vector<2x128xf32>
    %cst_23 = arith.constant dense<0.000000e+00> : vector<2x128xf32>
    %67 = tpu.matmul %65, %10, %cst_23 {dimension_numbers = #tpu.dot_dimension_numbers<[1], [0], [0], [1], [0, 0, 1, 1], [], []>} : vector<2x32xf32>, vector<32x128xf32>, vector<2x128xf32> -> vector<2x128xf32>
    %68 = arith.addf %66, %67 : vector<2x128xf32>
    %69 = arith.mulf %68, %8 : vector<2x128xf32>
    %70 = arith.negf %69 : vector<2x128xf32>
    %71 = math.exp %70 : vector<2x128xf32>
    %cst_24 = arith.constant 1.000000e+00 : f32
    %72 = vector.broadcast %cst_24 : f32 to vector<2x128xf32>
    %73 = arith.addf %72, %71 : vector<2x128xf32>
    %74 = arith.divf %72, %73 : vector<2x128xf32>
    %cst_25 = arith.constant 2.000000e+00 : f32
    %75 = vector.broadcast %cst_25 : f32 to vector<2x128xf32>
    %76 = arith.mulf %75, %74 : vector<2x128xf32>
    %cst_26 = arith.constant 1.000000e+00 : f32
    %77 = vector.broadcast %cst_26 : f32 to vector<2x128xf32>
    %78 = arith.subf %76, %77 : vector<2x128xf32>
    %79 = arith.select %5, %78, %74 : vector<2x128xi1>, vector<2x128xf32>
    %80 = vector.extract_strided_slice %79 {offsets = [0, 0], sizes = [2, 32], strides = [1, 1]} : vector<2x128xf32> to vector<2x32xf32>
    %81 = vector.extract_strided_slice %79 {offsets = [0, 32], sizes = [2, 32], strides = [1, 1]} : vector<2x128xf32> to vector<2x32xf32>
    %82 = vector.extract_strided_slice %79 {offsets = [0, 64], sizes = [2, 32], strides = [1, 1]} : vector<2x128xf32> to vector<2x32xf32>
    %83 = vector.extract_strided_slice %79 {offsets = [0, 96], sizes = [2, 32], strides = [1, 1]} : vector<2x128xf32> to vector<2x32xf32>
    %84 = arith.mulf %81, %63 : vector<2x32xf32>
    %85 = arith.mulf %80, %82 : vector<2x32xf32>
    %86 = arith.addf %84, %85 : vector<2x32xf32>
    %87 = math.tanh %86 : vector<2x32xf32>
    %88 = arith.mulf %83, %87 : vector<2x32xf32>
    %89 = vector.extract_strided_slice %15 {offsets = [6, 0], sizes = [2, 128], strides = [1, 1]} : vector<16x128xf32> to vector<2x128xf32>
    %cst_27 = arith.constant dense<0.000000e+00> : vector<2x128xf32>
    %90 = tpu.matmul %88, %10, %cst_27 {dimension_numbers = #tpu.dot_dimension_numbers<[1], [0], [0], [1], [0, 0, 1, 1], [], []>} : vector<2x32xf32>, vector<32x128xf32>, vector<2x128xf32> -> vector<2x128xf32>
    %91 = arith.addf %89, %90 : vector<2x128xf32>
    %92 = arith.mulf %91, %8 : vector<2x128xf32>
    %93 = arith.negf %92 : vector<2x128xf32>
    %94 = math.exp %93 : vector<2x128xf32>
    %cst_28 = arith.constant 1.000000e+00 : f32
    %95 = vector.broadcast %cst_28 : f32 to vector<2x128xf32>
    %96 = arith.addf %95, %94 : vector<2x128xf32>
    %97 = arith.divf %95, %96 : vector<2x128xf32>
    %cst_29 = arith.constant 2.000000e+00 : f32
    %98 = vector.broadcast %cst_29 : f32 to vector<2x128xf32>
    %99 = arith.mulf %98, %97 : vector<2x128xf32>
    %cst_30 = arith.constant 1.000000e+00 : f32
    %100 = vector.broadcast %cst_30 : f32 to vector<2x128xf32>
    %101 = arith.subf %99, %100 : vector<2x128xf32>
    %102 = arith.select %5, %101, %97 : vector<2x128xi1>, vector<2x128xf32>
    %103 = vector.extract_strided_slice %102 {offsets = [0, 0], sizes = [2, 32], strides = [1, 1]} : vector<2x128xf32> to vector<2x32xf32>
    %104 = vector.extract_strided_slice %102 {offsets = [0, 32], sizes = [2, 32], strides = [1, 1]} : vector<2x128xf32> to vector<2x32xf32>
    %105 = vector.extract_strided_slice %102 {offsets = [0, 64], sizes = [2, 32], strides = [1, 1]} : vector<2x128xf32> to vector<2x32xf32>
    %106 = vector.extract_strided_slice %102 {offsets = [0, 96], sizes = [2, 32], strides = [1, 1]} : vector<2x128xf32> to vector<2x32xf32>
    %107 = arith.mulf %104, %86 : vector<2x32xf32>
    %108 = arith.mulf %103, %105 : vector<2x32xf32>
    %109 = arith.addf %107, %108 : vector<2x32xf32>
    %110 = math.tanh %109 : vector<2x32xf32>
    %111 = arith.mulf %106, %110 : vector<2x32xf32>
    %112 = vector.extract_strided_slice %15 {offsets = [8, 0], sizes = [2, 128], strides = [1, 1]} : vector<16x128xf32> to vector<2x128xf32>
    %cst_31 = arith.constant dense<0.000000e+00> : vector<2x128xf32>
    %113 = tpu.matmul %111, %10, %cst_31 {dimension_numbers = #tpu.dot_dimension_numbers<[1], [0], [0], [1], [0, 0, 1, 1], [], []>} : vector<2x32xf32>, vector<32x128xf32>, vector<2x128xf32> -> vector<2x128xf32>
    %114 = arith.addf %112, %113 : vector<2x128xf32>
    %115 = arith.mulf %114, %8 : vector<2x128xf32>
    %116 = arith.negf %115 : vector<2x128xf32>
    %117 = math.exp %116 : vector<2x128xf32>
    %cst_32 = arith.constant 1.000000e+00 : f32
    %118 = vector.broadcast %cst_32 : f32 to vector<2x128xf32>
    %119 = arith.addf %118, %117 : vector<2x128xf32>
    %120 = arith.divf %118, %119 : vector<2x128xf32>
    %cst_33 = arith.constant 2.000000e+00 : f32
    %121 = vector.broadcast %cst_33 : f32 to vector<2x128xf32>
    %122 = arith.mulf %121, %120 : vector<2x128xf32>
    %cst_34 = arith.constant 1.000000e+00 : f32
    %123 = vector.broadcast %cst_34 : f32 to vector<2x128xf32>
    %124 = arith.subf %122, %123 : vector<2x128xf32>
    %125 = arith.select %5, %124, %120 : vector<2x128xi1>, vector<2x128xf32>
    %126 = vector.extract_strided_slice %125 {offsets = [0, 0], sizes = [2, 32], strides = [1, 1]} : vector<2x128xf32> to vector<2x32xf32>
    %127 = vector.extract_strided_slice %125 {offsets = [0, 32], sizes = [2, 32], strides = [1, 1]} : vector<2x128xf32> to vector<2x32xf32>
    %128 = vector.extract_strided_slice %125 {offsets = [0, 64], sizes = [2, 32], strides = [1, 1]} : vector<2x128xf32> to vector<2x32xf32>
    %129 = vector.extract_strided_slice %125 {offsets = [0, 96], sizes = [2, 32], strides = [1, 1]} : vector<2x128xf32> to vector<2x32xf32>
    %130 = arith.mulf %127, %109 : vector<2x32xf32>
    %131 = arith.mulf %126, %128 : vector<2x32xf32>
    %132 = arith.addf %130, %131 : vector<2x32xf32>
    %133 = math.tanh %132 : vector<2x32xf32>
    %134 = arith.mulf %129, %133 : vector<2x32xf32>
    %135 = vector.extract_strided_slice %15 {offsets = [10, 0], sizes = [2, 128], strides = [1, 1]} : vector<16x128xf32> to vector<2x128xf32>
    %cst_35 = arith.constant dense<0.000000e+00> : vector<2x128xf32>
    %136 = tpu.matmul %134, %10, %cst_35 {dimension_numbers = #tpu.dot_dimension_numbers<[1], [0], [0], [1], [0, 0, 1, 1], [], []>} : vector<2x32xf32>, vector<32x128xf32>, vector<2x128xf32> -> vector<2x128xf32>
    %137 = arith.addf %135, %136 : vector<2x128xf32>
    %138 = arith.mulf %137, %8 : vector<2x128xf32>
    %139 = arith.negf %138 : vector<2x128xf32>
    %140 = math.exp %139 : vector<2x128xf32>
    %cst_36 = arith.constant 1.000000e+00 : f32
    %141 = vector.broadcast %cst_36 : f32 to vector<2x128xf32>
    %142 = arith.addf %141, %140 : vector<2x128xf32>
    %143 = arith.divf %141, %142 : vector<2x128xf32>
    %cst_37 = arith.constant 2.000000e+00 : f32
    %144 = vector.broadcast %cst_37 : f32 to vector<2x128xf32>
    %145 = arith.mulf %144, %143 : vector<2x128xf32>
    %cst_38 = arith.constant 1.000000e+00 : f32
    %146 = vector.broadcast %cst_38 : f32 to vector<2x128xf32>
    %147 = arith.subf %145, %146 : vector<2x128xf32>
    %148 = arith.select %5, %147, %143 : vector<2x128xi1>, vector<2x128xf32>
    %149 = vector.extract_strided_slice %148 {offsets = [0, 0], sizes = [2, 32], strides = [1, 1]} : vector<2x128xf32> to vector<2x32xf32>
    %150 = vector.extract_strided_slice %148 {offsets = [0, 32], sizes = [2, 32], strides = [1, 1]} : vector<2x128xf32> to vector<2x32xf32>
    %151 = vector.extract_strided_slice %148 {offsets = [0, 64], sizes = [2, 32], strides = [1, 1]} : vector<2x128xf32> to vector<2x32xf32>
    %152 = vector.extract_strided_slice %148 {offsets = [0, 96], sizes = [2, 32], strides = [1, 1]} : vector<2x128xf32> to vector<2x32xf32>
    %153 = arith.mulf %150, %132 : vector<2x32xf32>
    %154 = arith.mulf %149, %151 : vector<2x32xf32>
    %155 = arith.addf %153, %154 : vector<2x32xf32>
    %156 = math.tanh %155 : vector<2x32xf32>
    %157 = arith.mulf %152, %156 : vector<2x32xf32>
    %158 = vector.extract_strided_slice %15 {offsets = [12, 0], sizes = [2, 128], strides = [1, 1]} : vector<16x128xf32> to vector<2x128xf32>
    %cst_39 = arith.constant dense<0.000000e+00> : vector<2x128xf32>
    %159 = tpu.matmul %157, %10, %cst_39 {dimension_numbers = #tpu.dot_dimension_numbers<[1], [0], [0], [1], [0, 0, 1, 1], [], []>} : vector<2x32xf32>, vector<32x128xf32>, vector<2x128xf32> -> vector<2x128xf32>
    %160 = arith.addf %158, %159 : vector<2x128xf32>
    %161 = arith.mulf %160, %8 : vector<2x128xf32>
    %162 = arith.negf %161 : vector<2x128xf32>
    %163 = math.exp %162 : vector<2x128xf32>
    %cst_40 = arith.constant 1.000000e+00 : f32
    %164 = vector.broadcast %cst_40 : f32 to vector<2x128xf32>
    %165 = arith.addf %164, %163 : vector<2x128xf32>
    %166 = arith.divf %164, %165 : vector<2x128xf32>
    %cst_41 = arith.constant 2.000000e+00 : f32
    %167 = vector.broadcast %cst_41 : f32 to vector<2x128xf32>
    %168 = arith.mulf %167, %166 : vector<2x128xf32>
    %cst_42 = arith.constant 1.000000e+00 : f32
    %169 = vector.broadcast %cst_42 : f32 to vector<2x128xf32>
    %170 = arith.subf %168, %169 : vector<2x128xf32>
    %171 = arith.select %5, %170, %166 : vector<2x128xi1>, vector<2x128xf32>
    %172 = vector.extract_strided_slice %171 {offsets = [0, 0], sizes = [2, 32], strides = [1, 1]} : vector<2x128xf32> to vector<2x32xf32>
    %173 = vector.extract_strided_slice %171 {offsets = [0, 32], sizes = [2, 32], strides = [1, 1]} : vector<2x128xf32> to vector<2x32xf32>
    %174 = vector.extract_strided_slice %171 {offsets = [0, 64], sizes = [2, 32], strides = [1, 1]} : vector<2x128xf32> to vector<2x32xf32>
    %175 = vector.extract_strided_slice %171 {offsets = [0, 96], sizes = [2, 32], strides = [1, 1]} : vector<2x128xf32> to vector<2x32xf32>
    %176 = arith.mulf %173, %155 : vector<2x32xf32>
    %177 = arith.mulf %172, %174 : vector<2x32xf32>
    %178 = arith.addf %176, %177 : vector<2x32xf32>
    %179 = math.tanh %178 : vector<2x32xf32>
    %180 = arith.mulf %175, %179 : vector<2x32xf32>
    %181 = vector.extract_strided_slice %15 {offsets = [14, 0], sizes = [2, 128], strides = [1, 1]} : vector<16x128xf32> to vector<2x128xf32>
    %cst_43 = arith.constant dense<0.000000e+00> : vector<2x128xf32>
    %182 = tpu.matmul %180, %10, %cst_43 {dimension_numbers = #tpu.dot_dimension_numbers<[1], [0], [0], [1], [0, 0, 1, 1], [], []>} : vector<2x32xf32>, vector<32x128xf32>, vector<2x128xf32> -> vector<2x128xf32>
    %183 = arith.addf %181, %182 : vector<2x128xf32>
    %184 = arith.mulf %183, %8 : vector<2x128xf32>
    %185 = arith.negf %184 : vector<2x128xf32>
    %186 = math.exp %185 : vector<2x128xf32>
    %cst_44 = arith.constant 1.000000e+00 : f32
    %187 = vector.broadcast %cst_44 : f32 to vector<2x128xf32>
    %188 = arith.addf %187, %186 : vector<2x128xf32>
    %189 = arith.divf %187, %188 : vector<2x128xf32>
    %cst_45 = arith.constant 2.000000e+00 : f32
    %190 = vector.broadcast %cst_45 : f32 to vector<2x128xf32>
    %191 = arith.mulf %190, %189 : vector<2x128xf32>
    %cst_46 = arith.constant 1.000000e+00 : f32
    %192 = vector.broadcast %cst_46 : f32 to vector<2x128xf32>
    %193 = arith.subf %191, %192 : vector<2x128xf32>
    %194 = arith.select %5, %193, %189 : vector<2x128xi1>, vector<2x128xf32>
    %195 = vector.extract_strided_slice %194 {offsets = [0, 0], sizes = [2, 32], strides = [1, 1]} : vector<2x128xf32> to vector<2x32xf32>
    %196 = vector.extract_strided_slice %194 {offsets = [0, 32], sizes = [2, 32], strides = [1, 1]} : vector<2x128xf32> to vector<2x32xf32>
    %197 = vector.extract_strided_slice %194 {offsets = [0, 64], sizes = [2, 32], strides = [1, 1]} : vector<2x128xf32> to vector<2x32xf32>
    %198 = vector.extract_strided_slice %194 {offsets = [0, 96], sizes = [2, 32], strides = [1, 1]} : vector<2x128xf32> to vector<2x32xf32>
    %199 = arith.mulf %196, %178 : vector<2x32xf32>
    %200 = arith.mulf %195, %197 : vector<2x32xf32>
    %201 = arith.addf %199, %200 : vector<2x32xf32>
    %202 = math.tanh %201 : vector<2x32xf32>
    %203 = arith.mulf %198, %202 : vector<2x32xf32>
    %c0_47 = arith.constant 0 : index
    %c0_48 = arith.constant 0 : index
    %c0_49 = arith.constant 0 : index
    %204 = vector.load %arg9[%c0_47, %c0_48, %c0_49] : memref<1x2x32xf32, #tpu.memory_space<vmem>>, vector<1x2x32xf32>
    %205 = vector.shape_cast %204 : vector<1x2x32xf32> to vector<2x32xf32>
    %206 = vector.shape_cast %203 : vector<2x32xf32> to vector<1x2x32xf32>
    tpu.vector_store %arg9[%c0_47, %c0_48, %c0_49], %206 {strides = array<i32>} : memref<1x2x32xf32, #tpu.memory_space<vmem>>, vector<1x2x32xf32>,
    %c0_50 = arith.constant 0 : index
    %c0_51 = arith.constant 0 : index
    %c0_52 = arith.constant 0 : index
    %207 = vector.load %arg10[%c0_50, %c0_51, %c0_52] : memref<1x2x32xf32, #tpu.memory_space<vmem>>, vector<1x2x32xf32>
    %208 = vector.shape_cast %207 : vector<1x2x32xf32> to vector<2x32xf32>
    %209 = vector.shape_cast %201 : vector<2x32xf32> to vector<1x2x32xf32>
    tpu.vector_store %arg10[%c0_50, %c0_51, %c0_52], %209 {strides = array<i32>} : memref<1x2x32xf32, #tpu.memory_space<vmem>>, vector<1x2x32xf32>,
    %210 = tpu.concatenate %42, %65, %88, %111, %134, %157, %180, %203 in 0 : vector<2x32xf32>, vector<2x32xf32>, vector<2x32xf32>, vector<2x32xf32>, vector<2x32xf32>, vector<2x32xf32>, vector<2x32xf32>, vector<2x32xf32> -> vector<16x32xf32>
    %c0_53 = arith.constant 0 : index
    %c0_54 = arith.constant 0 : index
    %211 = vector.load %arg6[%c0_53, %c0_54] : memref<32x128xf32, #tpu.memory_space<vmem>>, vector<32x128xf32>
    %cst_55 = arith.constant dense<0.000000e+00> : vector<16x128xf32>
    %212 = tpu.matmul %210, %211, %cst_55 {dimension_numbers = #tpu.dot_dimension_numbers<[1], [0], [0], [1], [0, 0, 1, 1], [], []>} : vector<16x32xf32>, vector<32x128xf32>, vector<16x128xf32> -> vector<16x128xf32>
    %c0_56 = arith.constant 0 : index
    %c0_57 = arith.constant 0 : index
    %213 = vector.load %arg7[%c0_56, %c0_57] : memref<1x128xf32, #tpu.memory_space<vmem>>, vector<1x128xf32>
    %214 = vector.broadcast %213 : vector<1x128xf32> to vector<16x128xf32>
    %215 = arith.addf %212, %214 : vector<16x128xf32>
    %c0_58 = arith.constant 0 : index
    %c0_59 = arith.constant 0 : index
    %216 = vector.load %arg8[%c0_58, %c0_59] : memref<16x128xf32, #tpu.memory_space<vmem>>, vector<16x128xf32>
    tpu.vector_store %arg8[%c0_58, %c0_59], %215 {strides = array<i32>} : memref<16x128xf32, #tpu.memory_space<vmem>>, vector<16x128xf32>,
    return
  }
}

</mosaic_0001>

<bundles_post_ra>
// kernel: decoder_forward.1
= control target key start
LH: loop header
LB: loop body
LE: loop exit
PB: predicated region body
PF: predicated region fallthrough
CT: control target
= control target key end

     0   :  { %16 = vsyncpa [#allocation3], 0  ;;  %vm61_vm0 = vcmask 1043456   ;;  %vm54_vm1 = vcmask 31744   ;;  %v1446_v2 = vmov 0.0   ;;  %s1762_s0 = inlined_call_operand.vmem [shape: f32[16,4], index: 0, kind: input, shape index: {}]   ;;  %s1763_s1 = inlined_call_operand.vmem [shape: f32[1,2,32], index: 1, kind: input, shape index: {}]   ;;  %s1764_s2 = inlined_call_operand.vmem [shape: f32[1,2,32], index: 2, kind: input, shape index: {}]   ;;  %s1765_s3 = inlined_call_operand.vmem [shape: f32[4,128], index: 3, kind: input, shape index: {}]   ;;  %s1766_s4 = inlined_call_operand.vmem [shape: f32[32,128], index: 4, kind: input, shape index: {}]   ;;  %s1767_s5 = inlined_call_operand.vmem [shape: f32[1,128], index: 5, kind: input, shape index: {}]   ;;  %s1768_s6 = inlined_call_operand.vmem [shape: f32[32,128], index: 6, kind: input, shape index: {}]   ;;  %s1769_s7 = inlined_call_operand.vmem [shape: f32[1,128], index: 7, kind: input, shape index: {}]   ;;  %s1770_s8 = inlined_call_operand.vmem [shape: f32[16,128], index: 8, kind: output, shape index: {0}]   ;;  %s1771_s9 = inlined_call_operand.hbm [shape: f32[1,2,32], index: 9, kind: output, shape index: {1}]   ;;  %s1772_s10 = inlined_call_operand.hbm [shape: f32[1,2,32], index: 10, kind: output, shape index: {2}]  }
   0x1   :  { %v40_v0 = vld [vmem:[%s1765_s3] sm:$0xf]  ;;  %1247 = vmatprep.subr.mxu1 %v1446_v2  ;;  %v1520_v3 = vld [vmem:[%s1766_s4 + $0x18] sm:$0xff]  ;;  %v46_v4 = vld [vmem:[%s1762_s0 + $0x8] sm:$0xff] }
   0x2   :  { %v45_v1 = vld [vmem:[%s1762_s0] sm:$0xff]  ;;  %1242 = vmatprep.subr.msk.mxu0 %vm61_vm0, %v40_v0  ;;  %v1529_v5 = vld [vmem:[%s1766_s4 + $0x10] sm:$0xff]  ;;  %1248 = vmatpush3.msra.mxu1 %v1520_v3 }
   0x3   :  { %1243 = vmatpush3.msk.msra.mxu0 %vm61_vm0, %v40_v0  ;;  %1244 = vmatprep.mubr.msk.f32.mxu0 %vm54_vm1, %v45_v1 }
   0x4   :  { %1245 = vmatmul.mubr.msk.f32.vlgmr.msra.gmra.mxu0 %vm54_vm1, %v46_v4 }
   0x5   :  { %17 = vsyncpa [#allocation5], 0  ;;  %1249 = vmatprep.subr.mxu1 %v1446_v2  ;;  %v1536_v6 = vld [vmem:[%s1766_s4 + $0x8] sm:$0xff]  ;;  %vm1447_vm2 = vmmov 0   ;;  %1258 = vmatprep.subr.mxu0 %v1446_v2  ;;  %v1546_v7 = vld [vmem:[%s1766_s4] sm:$0xff]  ;;  %vm142_vm3 = vcmask 261120   ;;  %v34_v9 = vlaneseq }
   0x6   :  { %1255 = vmatprep.mubr.msk.f32.mxu1 %vm1447_vm2, %v1446_v2  ;;  %1250 = vmatpush3.msra.mxu1 %v1529_v5  ;;  %v140_v8 = vld [vmem:[%s1763_s1] sm:$0x3]  ;;  %v1448_v17 = vmov 1.0   ;;  %s1450_s29 = smov 32   ;;  %vm1024_vm7 = vcmask 1041408   ;;  %vm1027_vm8 = vcmask 1045504  }
   0x7   :  { %1251 = vmatprep.subr.mxu1 %v1446_v2  ;;  %1259 = vmatpush3.msra.mxu0 %v1520_v3  ;;  %v35_v10 = vand.u32 127, %v34_v9  ;;  %v1162_v11 = vld [vmem:[%s1767_s5] ss:$0 sm:$0xff]  ;;  %s1449_s5 = smov 64   ;;  %v1035_v15 = vld [vmem:[%s1768_s6 + $0x18] sm:$0xff]  ;;  %s1451_s17 = smov 96  }
   0x8   :  { %1252 = vmatpush3.msra.mxu1 %v1536_v6  ;;  %1260 = vmatprep.subr.mxu0 %v1446_v2  ;;  %v141_v30 = vld [vmem:[%s1764_s2] sm:$0x3]  ;;  %vm1017_vm9 = vcmask 261126   ;;  %s1453_s19 = smov [#allocation4]  }
   0x9   :  { %1253 = vmatprep.subr.mxu1 %v1446_v2  ;;  %1261 = vmatpush3.msra.mxu0 %v1529_v5  ;;  %vm36_vm4 = vcmp.ge.s32.totalorder %v35_v10, 64  ;;  %vm37_vm5 = vcmp.lt.s32.totalorder %v35_v10, 96  ;;  %s1148_s20 = sshll.u32 %s1453_s19, 4  ;;  %s1149_s20 = int_to_ptr.vmem [resolvable:$true] %s1148_s20 }
   0xa   :  { %1254 = vmatpush3.msra.mxu1 %v1546_v7  ;;  %1262 = vmatprep.subr.mxu0 %v1446_v2  ;;  %vm1581_vm6 = vmand %vm36_vm4, %vm37_vm5 }
   0xb   :  { %1256 = vmatmul.mubr.msk.f32.vlgmr.msra.gmra.mxu1 %vm142_vm3, %v140_v8  ;;  %1263 = vmatpush3.msra.mxu0 %v1536_v6  ;;  %v1589_v18 = vsel %vm1581_vm6, 2.0, %v1448_v17 }
   0xc   :  { %1264 = vmatprep.subr.mxu0 %v1446_v2  ;;  %1266 = vmatprep.mubr.msk.f32.mxu0 %vm1447_vm2, %v1446_v2 }
   0xd   :  { %1265 = vmatpush3.msra.mxu0 %v1546_v7  ;;  %1269 = vmatprep.subr.mxu1 %v1446_v2 }
   0xe   :  { %1270 = vmatpush3.msra.mxu1 %v1520_v3  ;;  %1277 = vmatprep.mubr.msk.f32.mxu1 %vm1447_vm2, %v1446_v2 }
   0xf   :  { %1271 = vmatprep.subr.mxu1 %v1446_v2  ;;  %1280 = vmatprep.subr.mxu0 %v1446_v2 }
  0x10   :  { %1272 = vmatpush3.msra.mxu1 %v1529_v5 }
  0x11   :  { %1273 = vmatprep.subr.mxu1 %v1446_v2 }
  0x12   :  { %1274 = vmatpush3.msra.mxu1 %v1536_v6 }
  0x13   :  { %1275 = vmatprep.subr.mxu1 %v1446_v2 }
  0x14   :  { %1276 = vmatpush3.msra.mxu1 %v1546_v7 }
  0x15   :  { %1291 = vmatprep.subr.mxu1 %v1446_v2 }
  0xc4   :  { %v1246_v12 = vpop.f32.mrf.mxu0 }
  0xc5   :  { %v1579_v13 = vadd.f32 %v1246_v12, %v1162_v11 }
  0xc6   :  { %v131_v14 = vpop.f32.mrf.mxu0 }
  0xc7   :  { %v1585_v16 = vadd.f32 %v1162_v11, %v131_v14 }
  0xcb   :  { %v212_v19 = vpop.f32.mrf.mxu1 }
  0xcc   :  { %v216_v20 = vadd.f32 %v212_v19, %v1585_v16 }
  0xcd   :  { %v1257_v21 = vpop.f32.mrf.mxu1 }
  0xce   :  { %v217_v22 = vmul.f32 %v216_v20, %v1589_v18 }
  0xd0   :  { %v1167_v23 = vmul.f32 -1.442695, %v217_v22 }
  0xd2   :  { %1354 = vpow2.f32 %v1167_v23 }
  0xdf   :  { %v1355_v24 = vpop.eup %1354 }
  0xe0   :  { %v221_v25 = vadd.f32 1.0, %v1355_v24 }
  0xe2   :  { %1356 = vrcp.f32 %v221_v25 }
  0xef   :  { %v1357_v26 = vpop.eup %1356 }
  0xf0   :  { %v224_v27 = vmul.f32 2.0, %v1357_v26 }
  0xf2   :  { %v1168_v28 = vadd.f32 -1.0, %v224_v27 }
  0xf4   :  { %v226_v29 = vsel %vm1581_vm6, %v1168_v28, %v1357_v26 }
  0xf5   :  { %233 = vrot.lane.b32.xlu0 %v226_v29, %s1449_s5 }
  0xf9   :  { %228 = vrot.lane.b32.xlu0 %v141_v30, %s1450_s29 }
 0x167   :  { %v234_v31 = vpop.permute.xlu0 %233 }
 0x168   :  { %v236_v32 = vmul.f32 %v234_v31, %v226_v29 }
 0x16a   :  { %238 = vrot.lane.b32.xlu1 %v236_v32, %s1450_s29 }
 0x16b   :  { %v229_v33 = vpop.permute.xlu0 %228 }
 0x16c   :  { %v231_v34 = vmul.f32 %v229_v33, %v226_v29 }
 0x1dc   :  { %v239_v35 = vpop.permute.xlu1 %238 }
 0x1dd   :  { %v241_v36 = vadd.f32 %v239_v35, %v231_v34 }
 0x1df   :  { %1358 = vtanh.f32 %v241_v36  ;;  %v338_v55 = vrot.slane %v241_v36, 6 }
 0x1ec   :  { %v1359_v37 = vpop.eup %1358 }
 0x1ed   :  { %244 = vrot.lane.b32.xlu1 %v1359_v37, %s1449_s5 }
 0x25f   :  { %v245_v38 = vpop.permute.xlu1 %244 }
 0x260   :  { %v1602_v39 = vmul.f32 %v245_v38, %v226_v29 }
 0x262   :  { %249 = vrot.lane.b32.xlu0 %v1602_v39, %s1450_s29 }
 0x2d4   :  { %v250_v40 = vpop.permute.xlu0 %249 }
 0x2d5   :  { %1267 = vmatmul.mubr.msk.f32.vlgmr.msra.gmra.mxu0 %vm142_vm3, %v250_v40 }
 0x2d6   :  { %1281 = vmatpush3.msra.mxu0 %v1520_v3  ;;  %1288 = vmatprep.mubr.msk.f32.mxu0 %vm1447_vm2, %v1446_v2 }
 0x2d7   :  { %1282 = vmatprep.subr.mxu0 %v1446_v2 }
 0x2d8   :  { %1283 = vmatpush3.msra.mxu0 %v1529_v5 }
 0x2d9   :  { %1284 = vmatprep.subr.mxu0 %v1446_v2 }
 0x2da   :  { %1285 = vmatpush3.msra.mxu0 %v1536_v6 }
 0x2db   :  { %1286 = vmatprep.subr.mxu0 %v1446_v2 }
 0x2dc   :  { %1287 = vmatpush3.msra.mxu0 %v1546_v7 }
 0x2dd   :  { %1302 = vmatprep.subr.mxu0 %v1446_v2 }
 0x395   :  { %v319_v41 = vpop.f32.mrf.mxu0 }
 0x396   :  { %v324_v42 = vrot.slane %v319_v41, 6 }
 0x397   :  { %v1268_v43 = vpop.f32.mrf.mxu0 }
 0x398   :  { %v326_v44 = vadd.f32 %v324_v42, %v1585_v16 }
 0x39a   :  { %v327_v45 = vmul.f32 %v326_v44, %v1589_v18 }
 0x39c   :  { %v1170_v46 = vmul.f32 -1.442695, %v327_v45 }
 0x39e   :  { %1360 = vpow2.f32 %v1170_v46 }
 0x3ab   :  { %v1361_v47 = vpop.eup %1360 }
 0x3ac   :  { %v331_v48 = vadd.f32 1.0, %v1361_v47 }
 0x3ae   :  { %1362 = vrcp.f32 %v331_v48 }
 0x3bb   :  { %v1363_v49 = vpop.eup %1362 }
 0x3bc   :  { %v334_v50 = vmul.f32 2.0, %v1363_v49 }
 0x3be   :  { %v1171_v51 = vadd.f32 -1.0, %v334_v50 }
 0x3c0   :  { %v336_v52 = vsel %vm1581_vm6, %v1171_v51, %v1363_v49 }
 0x3c1   :  { %342 = vrot.lane.b32.xlu1 %v336_v52, %s1449_s5  ;;  %v340_v56 = vmul.f32 %v338_v55, %v336_v52 }
 0x433   :  { %v343_v53 = vpop.permute.xlu1 %342 }
 0x434   :  { %v345_v54 = vmul.f32 %v343_v53, %v336_v52 }
 0x436   :  { %347 = vrot.lane.b32.xlu0 %v345_v54, %s1450_s29 }
 0x4a8   :  { %v348_v57 = vpop.permute.xlu0 %347 }
 0x4a9   :  { %v350_v58 = vadd.f32 %v348_v57, %v340_v56 }
 0x4ab   :  { %1364 = vtanh.f32 %v350_v58  ;;  %v448_v23 = vrot.slane %v350_v58, 6 }
 0x4b8   :  { %v1365_v59 = vpop.eup %1364 }
 0x4b9   :  { %353 = vrot.lane.b32.xlu1 %v1365_v59, %s1449_s5 }
 0x52b   :  { %v354_v60 = vpop.permute.xlu1 %353 }
 0x52c   :  { %v356_v61 = vmul.f32 %v354_v60, %v336_v52 }
 0x52e   :  { %v358_v62 = vrot.slane %v356_v61, 2  ;;  %v1025_v30 = vsel %vm1024_vm7, %v1602_v39, %v356_v61 }
 0x530   :  { %359 = vrot.lane.b32.xlu0 %v358_v62, %s1450_s29 }
 0x5a2   :  { %v360_v63 = vpop.permute.xlu0 %359 }
 0x5a3   :  { %1278 = vmatmul.mubr.msk.f32.vlgmr.msra.gmra.mxu1 %vm142_vm3, %v360_v63 }
 0x5a4   :  { %1292 = vmatpush3.msra.mxu1 %v1520_v3  ;;  %1299 = vmatprep.mubr.msk.f32.mxu1 %vm1447_vm2, %v1446_v2 }
 0x5a5   :  { %1293 = vmatprep.subr.mxu1 %v1446_v2 }
 0x5a6   :  { %1294 = vmatpush3.msra.mxu1 %v1529_v5 }
 0x5a7   :  { %1295 = vmatprep.subr.mxu1 %v1446_v2 }
 0x5a8   :  { %1296 = vmatpush3.msra.mxu1 %v1536_v6 }
 0x5a9   :  { %1297 = vmatprep.subr.mxu1 %v1446_v2 }
 0x5aa   :  { %1298 = vmatpush3.msra.mxu1 %v1546_v7 }
 0x5ab   :  { %1313 = vmatprep.subr.mxu1 %v1446_v2 }
 0x663   :  { %v429_v0 = vpop.f32.mrf.mxu1 }
 0x664   :  { %v434_v1 = vrot.slane %v429_v0, 4 }
 0x665   :  { %v1279_v4 = vpop.f32.mrf.mxu1 }
 0x666   :  { %v436_v8 = vadd.f32 %v434_v1, %v1585_v16 }
 0x668   :  { %v437_v9 = vmul.f32 %v436_v8, %v1589_v18 }
 0x66a   :  { %v1173_v10 = vmul.f32 -1.442695, %v437_v9 }
 0x66c   :  { %1366 = vpow2.f32 %v1173_v10 }
 0x679   :  { %v1367_v11 = vpop.eup %1366 }
 0x67a   :  { %v441_v12 = vadd.f32 1.0, %v1367_v11 }
 0x67c   :  { %1368 = vrcp.f32 %v441_v12 }
 0x689   :  { %v1369_v14 = vpop.eup %1368 }
 0x68a   :  { %v444_v17 = vmul.f32 2.0, %v1369_v14 }
 0x68c   :  { %v1174_v19 = vadd.f32 -1.0, %v444_v17 }
 0x68e   :  { %v446_v20 = vsel %vm1581_vm6, %v1174_v19, %v1369_v14 }
 0x68f   :  { %452 = vrot.lane.b32.xlu1 %v446_v20, %s1449_s5  ;;  %v450_v24 = vmul.f32 %v448_v23, %v446_v20 }
 0x701   :  { %v453_v21 = vpop.permute.xlu1 %452 }
 0x702   :  { %v455_v22 = vmul.f32 %v453_v21, %v446_v20 }
 0x704   :  { %457 = vrot.lane.b32.xlu0 %v455_v22, %s1450_s29 }
 0x776   :  { %v458_v25 = vpop.permute.xlu0 %457 }
 0x777   :  { %v460_v26 = vadd.f32 %v458_v25, %v450_v24 }
 0x779   :  { %1370 = vtanh.f32 %v460_v26 }
 0x786   :  { %v1371_v27 = vpop.eup %1370 }
 0x787   :  { %463 = vrot.lane.b32.xlu1 %v1371_v27, %s1449_s5 }
 0x7f9   :  { %v464_v28 = vpop.permute.xlu1 %463 }
 0x7fa   :  { %v466_v29 = vmul.f32 %v464_v28, %v446_v20 }
 0x7fc   :  { %v468_v31 = vrot.slane %v466_v29, 4  ;;  %v1026_v32 = vsel %vm61_vm0, %v1025_v30, %v466_v29 }
 0x7fe   :  { %469 = vrot.lane.b32.xlu0 %v468_v31, %s1450_s29 }
 0x870   :  { %v470_v33 = vpop.permute.xlu0 %469 }
 0x871   :  { %1289 = vmatmul.mubr.msk.f32.vlgmr.msra.gmra.mxu0 %vm142_vm3, %v470_v33 }
 0x872   :  { %1303 = vmatpush3.msra.mxu0 %v1520_v3  ;;  %1310 = vmatprep.mubr.msk.f32.mxu0 %vm1447_vm2, %v1446_v2 }
 0x873   :  { %1304 = vmatprep.subr.mxu0 %v1446_v2 }
 0x874   :  { %1305 = vmatpush3.msra.mxu0 %v1529_v5 }
 0x875   :  { %1306 = vmatprep.subr.mxu0 %v1446_v2 }
 0x876   :  { %1307 = vmatpush3.msra.mxu0 %v1536_v6 }
 0x877   :  { %1308 = vmatprep.subr.mxu0 %v1446_v2 }
 0x878   :  { %1309 = vmatpush3.msra.mxu0 %v1546_v7 }
 0x879   :  { %1324 = vmatprep.subr.mxu0 %v1446_v2 }
 0x931   :  { %v539_v34 = vpop.f32.mrf.mxu0 }
 0x932   :  { %v544_v35 = vrot.slane %v539_v34, 2 }
 0x933   :  { %v1290_v36 = vpop.f32.mrf.mxu0 }
 0x934   :  { %v546_v37 = vadd.f32 %v544_v35, %v1585_v16  ;;  %v558_v16 = vrot.slane %v460_v26, 6 }
 0x936   :  { %v547_v38 = vmul.f32 %v546_v37, %v1589_v18 }
 0x938   :  { %v1176_v39 = vmul.f32 -1.442695, %v547_v38 }
 0x93a   :  { %1372 = vpow2.f32 %v1176_v39 }
 0x947   :  { %v1373_v40 = vpop.eup %1372 }
 0x948   :  { %v551_v41 = vadd.f32 1.0, %v1373_v40 }
 0x94a   :  { %1374 = vrcp.f32 %v551_v41 }
 0x957   :  { %v1375_v42 = vpop.eup %1374 }
 0x958   :  { %v554_v43 = vmul.f32 2.0, %v1375_v42 }
 0x95a   :  { %v1177_v44 = vadd.f32 -1.0, %v554_v43 }
 0x95c   :  { %v556_v45 = vsel %vm1581_vm6, %v1177_v44, %v1375_v42 }
 0x95d   :  { %562 = vrot.lane.b32.xlu1 %v556_v45, %s1449_s5  ;;  %v560_v48 = vmul.f32 %v558_v16, %v556_v45 }
 0x9cf   :  { %v563_v46 = vpop.permute.xlu1 %562 }
 0x9d0   :  { %v565_v47 = vmul.f32 %v563_v46, %v556_v45 }
 0x9d2   :  { %567 = vrot.lane.b32.xlu0 %v565_v47, %s1450_s29 }
 0xa44   :  { %v568_v49 = vpop.permute.xlu0 %567 }
 0xa45   :  { %v570_v50 = vadd.f32 %v568_v49, %v560_v48 }
 0xa47   :  { %1376 = vtanh.f32 %v570_v50  ;;  %v665_v11 = vrot.slane %v570_v50, 6 }
 0xa54   :  { %v1377_v51 = vpop.eup %1376 }
 0xa55   :  { %573 = vrot.lane.b32.xlu1 %v1377_v51, %s1449_s5 }
 0xac7   :  { %v574_v52 = vpop.permute.xlu1 %573 }
 0xac8   :  { %v576_v53 = vmul.f32 %v574_v52, %v556_v45 }
 0xaca   :  { %v578_v54 = vrot.slane %v576_v53, 6  ;;  %v1666_v55 = vsel %vm1027_vm8, %v1026_v32, %v576_v53 }
 0xacc   :  { %579 = vrot.lane.b32.xlu0 %v578_v54, %s1450_s29 }
 0xb3e   :  { %v580_v56 = vpop.permute.xlu0 %579 }
 0xb3f   :  { %1300 = vmatmul.mubr.msk.f32.vlgmr.msra.gmra.mxu1 %vm142_vm3, %v580_v56 }
 0xb40   :  { %1314 = vmatpush3.msra.mxu1 %v1520_v3  ;;  %1321 = vmatprep.mubr.msk.f32.mxu1 %vm1447_vm2, %v1446_v2 }
 0xb41   :  { %1315 = vmatprep.subr.mxu1 %v1446_v2 }
 0xb42   :  { %1316 = vmatpush3.msra.mxu1 %v1529_v5 }
 0xb43   :  { %1317 = vmatprep.subr.mxu1 %v1446_v2 }
 0xb44   :  { %1318 = vmatpush3.msra.mxu1 %v1536_v6 }
 0xb45   :  { %1319 = vmatprep.subr.mxu1 %v1446_v2 }
 0xb46   :  { %1320 = vmatpush3.msra.mxu1 %v1546_v7 }
 0xb47   :  { %1335 = vmatprep.subr.mxu1 %v1035_v15 }
 0xbff   :  { %v649_v57 = vpop.f32.mrf.mxu1 }
 0xc00   :  { %v653_v58 = vadd.f32 %v649_v57, %v1579_v13 }
 0xc01   :  { %v1301_v59 = vpop.f32.mrf.mxu1 }
 0xc02   :  { %v654_v60 = vmul.f32 %v653_v58, %v1589_v18 }
 0xc04   :  { %v1179_v61 = vmul.f32 -1.442695, %v654_v60 }
 0xc06   :  { %1378 = vpow2.f32 %v1179_v61 }
 0xc13   :  { %v1379_v62 = vpop.eup %1378 }
 0xc14   :  { %v658_v63 = vadd.f32 1.0, %v1379_v62 }
 0xc16   :  { %1380 = vrcp.f32 %v658_v63 }
 0xc23   :  { %v1381_v0 = vpop.eup %1380 }
 0xc24   :  { %v661_v1 = vmul.f32 2.0, %v1381_v0 }
 0xc26   :  { %v1180_v4 = vadd.f32 -1.0, %v661_v1 }
 0xc28   :  { %v663_v8 = vsel %vm1581_vm6, %v1180_v4, %v1381_v0 }
 0xc29   :  { %669 = vrot.lane.b32.xlu1 %v663_v8, %s1449_s5  ;;  %v667_v12 = vmul.f32 %v665_v11, %v663_v8 }
 0xc9b   :  { %v670_v9 = vpop.permute.xlu1 %669 }
 0xc9c   :  { %v672_v10 = vmul.f32 %v670_v9, %v663_v8 }
 0xc9e   :  { %674 = vrot.lane.b32.xlu0 %v672_v10, %s1450_s29 }
 0xd10   :  { %v675_v14 = vpop.permute.xlu0 %674 }
 0xd11   :  { %v677_v17 = vadd.f32 %v675_v14, %v667_v12 }
 0xd13   :  { %1382 = vtanh.f32 %v677_v17  ;;  %v774_v32 = vrot.slane %v677_v17, 6 }
 0xd20   :  { %v1383_v19 = vpop.eup %1382 }
 0xd21   :  { %680 = vrot.lane.b32.xlu1 %v1383_v19, %s1449_s5 }
 0xd93   :  { %v681_v20 = vpop.permute.xlu1 %680 }
 0xd94   :  { %v1686_v21 = vmul.f32 %v681_v20, %v663_v8 }
 0xd96   :  { %685 = vrot.lane.b32.xlu0 %v1686_v21, %s1450_s29 }
 0xe08   :  { %v686_v22 = vpop.permute.xlu0 %685 }
 0xe09   :  { %1311 = vmatmul.mubr.msk.f32.vlgmr.msra.gmra.mxu0 %vm142_vm3, %v686_v22 }
 0xe0a   :  { %1325 = vmatpush3.msra.mxu0 %v1520_v3  ;;  %1332 = vmatprep.mubr.msk.f32.mxu0 %vm1447_vm2, %v1446_v2 }
 0xe0b   :  { %1326 = vmatprep.subr.mxu0 %v1446_v2 }
 0xe0c   :  { %1327 = vmatpush3.msra.mxu0 %v1529_v5 }
 0xe0d   :  { %1328 = vmatprep.subr.mxu0 %v1446_v2 }
 0xe0e   :  { %1329 = vmatpush3.msra.mxu0 %v1536_v6 }
 0xe0f   :  { %1330 = vmatprep.subr.mxu0 %v1446_v2 }
 0xe10   :  { %1331 = vmatpush3.msra.mxu0 %v1546_v7 }
 0xec9   :  { %v755_v23 = vpop.f32.mrf.mxu0 }
 0xeca   :  { %v760_v24 = vrot.slane %v755_v23, 6 }
 0xecb   :  { %v1312_v25 = vpop.f32.mrf.mxu0 }
 0xecc   :  { %v762_v3 = vadd.f32 %v760_v24, %v1579_v13 }
 0xece   :  { %v763_v26 = vmul.f32 %v762_v3, %v1589_v18 }
 0xed0   :  { %v1182_v27 = vmul.f32 -1.442695, %v763_v26 }
 0xed2   :  { %1384 = vpow2.f32 %v1182_v27  ;;  %v1034_v27 = vld [vmem:[%s1768_s6 + $0x10] sm:$0xff] }
 0xedf   :  { %v1385_v28 = vpop.eup %1384 }
 0xee0   :  { %v767_v29 = vadd.f32 1.0, %v1385_v28  ;;  %v1032_v28 = vld [vmem:[%s1768_s6] sm:$0xff] }
 0xee2   :  { %1386 = vrcp.f32 %v767_v29 }
 0xeef   :  { %v1387_v5 = vpop.eup %1386 }
 0xef0   :  { %v770_v30 = vmul.f32 2.0, %v1387_v5 }
 0xef2   :  { %v1183_v31 = vadd.f32 -1.0, %v770_v30 }
 0xef4   :  { %v772_v2 = vsel %vm1581_vm6, %v1183_v31, %v1387_v5 }
 0xef5   :  { %778 = vrot.lane.b32.xlu1 %v772_v2, %s1449_s5  ;;  %v776_v33 = vmul.f32 %v774_v32, %v772_v2 }
 0xf67   :  { %v779_v6 = vpop.permute.xlu1 %778 }
 0xf68   :  { %v781_v7 = vmul.f32 %v779_v6, %v772_v2 }
 0xf6a   :  { %783 = vrot.lane.b32.xlu0 %v781_v7, %s1450_s29 }
 0xfdc   :  { %v784_v34 = vpop.permute.xlu0 %783 }
 0xfdd   :  { %v786_v35 = vadd.f32 %v784_v34, %v776_v33 }
 0xfdf   :  { %1388 = vtanh.f32 %v786_v35  ;;  %v884_v54 = vrot.slane %v786_v35, 6 }
 0xfec   :  { %v1389_v36 = vpop.eup %1388 }
 0xfed   :  { %789 = vrot.lane.b32.xlu1 %v1389_v36, %s1449_s5 }
0x105f   :  { %v790_v37 = vpop.permute.xlu1 %789 }
0x1060   :  { %v792_v38 = vmul.f32 %v790_v37, %v772_v2 }
0x1062   :  { %v794_v39 = vrot.slane %v792_v38, 2  ;;  %v1029_v62 = vsel %vm1024_vm7, %v1686_v21, %v792_v38 }
0x1064   :  { %795 = vrot.lane.b32.xlu0 %v794_v39, %s1450_s29 }
0x10d6   :  { %v796_v40 = vpop.permute.xlu0 %795 }
0x10d7   :  { %1322 = vmatmul.mubr.msk.f32.vlgmr.msra.gmra.mxu1 %vm142_vm3, %v796_v40 }
0x10d8   :  { %1336 = vmatpush3.msra.mxu1 %v1035_v15 }
0x10d9   :  { %1337 = vmatprep.subr.mxu1 %v1034_v27 }
0x10da   :  { %1338 = vmatpush3.msra.mxu1 %v1034_v27 }
0x1197   :  { %v865_v41 = vpop.f32.mrf.mxu1 }
0x1198   :  { %v870_v42 = vrot.slane %v865_v41, 4 }
0x1199   :  { %v1323_v43 = vpop.f32.mrf.mxu1 }
0x119a   :  { %v872_v44 = vadd.f32 %v870_v42, %v1579_v13 }
0x119c   :  { %v873_v45 = vmul.f32 %v872_v44, %v1589_v18 }
0x119e   :  { %v1185_v46 = vmul.f32 -1.442695, %v873_v45 }
0x11a0   :  { %1390 = vpow2.f32 %v1185_v46 }
0x11ad   :  { %v1391_v47 = vpop.eup %1390 }
0x11ae   :  { %v877_v16 = vadd.f32 1.0, %v1391_v47 }
0x11b0   :  { %1392 = vrcp.f32 %v877_v16 }
0x11bd   :  { %v1393_v48 = vpop.eup %1392 }
0x11be   :  { %v880_v49 = vmul.f32 2.0, %v1393_v48 }
0x11c0   :  { %v1186_v50 = vadd.f32 -1.0, %v880_v49 }
0x11c2   :  { %v882_v51 = vsel %vm1581_vm6, %v1186_v50, %v1393_v48 }
0x11c3   :  { %888 = vrot.lane.b32.xlu1 %v882_v51, %s1449_s5  ;;  %v886_v56 = vmul.f32 %v884_v54, %v882_v51 }
0x1235   :  { %v889_v52 = vpop.permute.xlu1 %888 }
0x1236   :  { %v891_v53 = vmul.f32 %v889_v52, %v882_v51 }
0x1238   :  { %893 = vrot.lane.b32.xlu0 %v891_v53, %s1450_s29 }
0x12aa   :  { %v894_v57 = vpop.permute.xlu0 %893 }
0x12ab   :  { %v896_v58 = vadd.f32 %v894_v57, %v886_v56 }
0x12ad   :  { %1394 = vtanh.f32 %v896_v58 }
0x12ba   :  { %v1395_v59 = vpop.eup %1394 }
0x12bb   :  { %899 = vrot.lane.b32.xlu1 %v1395_v59, %s1449_s5 }
0x132d   :  { %v900_v60 = vpop.permute.xlu1 %899 }
0x132e   :  { %v902_v61 = vmul.f32 %v900_v60, %v882_v51 }
0x1330   :  { %v904_v63 = vrot.slane %v902_v61, 4  ;;  %v1030_v0 = vsel %vm61_vm0, %v1029_v62, %v902_v61 }
0x1332   :  { %905 = vrot.lane.b32.xlu0 %v904_v63, %s1450_s29 }
0x13a4   :  { %v906_v1 = vpop.permute.xlu0 %905 }
0x13a5   :  { %1333 = vmatmul.mubr.msk.f32.vlgmr.msra.gmra.mxu0 %vm142_vm3, %v906_v1 }
0x1465   :  { %v975_v4 = vpop.f32.mrf.mxu0 }
0x1466   :  { %v980_v8 = vrot.slane %v975_v4, 2 }
0x1467   :  { %v1334_v9 = vpop.f32.mrf.mxu0 }
0x1468   :  { %v982_v10 = vadd.f32 %v980_v8, %v1579_v13  ;;  %v994_v13 = vrot.slane %v896_v58, 6 }
0x146a   :  { %v983_v11 = vmul.f32 %v982_v10, %v1589_v18 }
0x146c   :  { %v1188_v12 = vmul.f32 -1.442695, %v983_v11 }
0x146e   :  { %1396 = vpow2.f32 %v1188_v12 }
0x147b   :  { %v1397_v14 = vpop.eup %1396 }
0x147c   :  { %v987_v17 = vadd.f32 1.0, %v1397_v14 }
0x147e   :  { %1398 = vrcp.f32 %v987_v17 }
0x148b   :  { %v1399_v19 = vpop.eup %1398 }
0x148c   :  { %v990_v20 = vmul.f32 2.0, %v1399_v19 }
0x148e   :  { %v1189_v21 = vadd.f32 -1.0, %v990_v20 }
0x1490   :  { %v992_v22 = vsel %vm1581_vm6, %v1189_v21, %v1399_v19 }
0x1491   :  { %998 = vrot.lane.b32.xlu1 %v992_v22, %s1449_s5  ;;  %v996_v18 = vmul.f32 %v994_v13, %v992_v22 }
0x1503   :  { %v999_v23 = vpop.permute.xlu1 %998 }
0x1504   :  { %v1001_v24 = vmul.f32 %v999_v23, %v992_v22 }
0x1506   :  { %1003 = vrot.lane.b32.xlu0 %v1001_v24, %s1450_s29 }
0x150a   :  { %1045 = vrot.lane.b32.xlu0 %v1666_v55, %s1450_s29  ;;  %v1033_v55 = vld [vmem:[%s1768_s6 + $0x8] sm:$0xff]  ;;  %s1452_s6 = smov [#allocation2]  }
0x150b   :  { %1339 = vmatprep.subr.mxu1 %v1033_v55  ;;  %s1138_s18 = sshll.u32 %s1452_s6, 4  ;;  %s1139_s18 = int_to_ptr.vmem [resolvable:$true] %s1138_s18 }
0x150c   :  { %1340 = vmatpush3.msra.mxu1 %v1033_v55  ;;  %s1402_s3 = scalar_lea.vmem %s1139_s18, 32  ;;  %p1407_p1 = scmp.lt.s32.totalorder %s1139_s18, %s1139_s18 }
0x150d   :  { %1341 = vmatprep.subr.mxu1 %v1032_v28  ;;  %p1403_p0 = scmp.ne.s32.totalorder %s1139_s18, %s1402_s3  ;;  %p1408_p2 = scmp.lt.s32.totalorder %s1402_s3, %s1402_s3 }
0x150e   :  { %1342 = vmatpush3.msra.mxu1 %v1032_v28 }
0x150f   :  { %p1409_p3 = por %p1408_p2, %p1407_p1 }
0x1511   :  { %p1410_p4 = pnand %p1409_p3, %p1403_p0 }
0x1578   :  { %v1004_v25 = vpop.permute.xlu0 %1003 }
0x1579   :  { %v1006_v3 = vadd.f32 %v1004_v25, %v996_v18 }
0x157b   :  { %1400 = vtanh.f32 %v1006_v3 }
0x157c   :  { %v1046_v26 = vpop.permute.xlu0 %1045 }
0x157d   :  { %1343 = vmatprep.mubr.msk.f32.mxu1 %vm142_vm3, %v1046_v26 }
0x1588   :  { %v1401_v29 = vpop.eup %1400 }
0x1589   :  { %1009 = vrot.lane.b32.xlu1 %v1401_v29, %s1449_s5 }
0x15fb   :  { %v1010_v5 = vpop.permute.xlu1 %1009 }
0x15fc   :  { %v1012_v30 = vmul.f32 %v1010_v5, %v992_v22 }
0x15fe   :  { %1014 = vrot.lane.b32.xlu0 %v1012_v30, %s1450_s29  ;;  %v1031_v31 = vsel %vm1027_vm8, %v1030_v0, %v1012_v30 }
0x15ff   :  { %1047 = vrot.lane.b32.xlu1 %v1031_v31, %s1450_s29 }
0x1603   :  { %1020 = vrot.lane.b32.xlu1 %v1006_v3, %s1451_s17 }
0x1670   :  { %v1015_v2 = vpop.permute.xlu0 %1014 }
0x1671   :  { %v1048_v6 = vpop.permute.xlu1 %1047  ;;  %1018 = vst.msk [vmem:[#allocation2 - $0x6] sm:$0xc0] %vm1017_vm9, %v1015_v2 }
0x1672   :  { %1344 = vmatmul.mubr.msk.f32.vlgmr.msra.gmra.mxu1 %vm142_vm3, %v1048_v6 }
0x1675   :  { %v1021_v7 = vpop.permute.xlu1 %1020 }
0x1676   :  { %1023 = vst.msk [vmem:[#allocation4 - $0x6] sm:$0xc0] %vm1017_vm9, %v1021_v7 }
0x1677   :  { %1413 = shalt.err (!%p1410_p4)
}
0x1678   :  { %1141 = dma.vmem_to_hbm [thread:$0]  %s1139_s18, 32, %s1771_s9, [#allocation3]  }
0x1679   :  { %s1422_s23 = scalar_lea.vmem %s1149_s20, 32  ;;  %p1427_p6 = scmp.lt.s32.totalorder %s1149_s20, %s1149_s20 }
0x167a   :  { %p1423_p5 = scmp.ne.s32.totalorder %s1149_s20, %s1422_s23  ;;  %p1428_p7 = scmp.lt.s32.totalorder %s1422_s23, %s1422_s23 }
0x167c   :  { %p1429_p8 = por %p1428_p7, %p1427_p6 }
0x167e   :  { %p1430_p9 = pnand %p1429_p8, %p1423_p5 }
0x1680   :  { %1433 = shalt.err (!%p1430_p9)
}
0x1681   :  { %1151 = dma.vmem_to_hbm [thread:$0]  %s1149_s20, 32, %s1772_s10, [#allocation5]   ;;  %v1190_v32 = vld [vmem:[%s1769_s7] ss:$0 sm:$0xff] }
0x1732   :  { %v1345_v33 = vpop.f32.mrf.mxu1 }
0x1733   :  { %v1125_v34 = vadd.f32 %v1345_v33, %v1190_v32 }
0x1734   :  { %v1119_v35 = vpop.f32.mrf.mxu1 }
0x1735   :  { %1129 = vst [vmem:[%s1770_s8 + $0x8] sm:$0xff] %v1125_v34  ;;  %v1120_v36 = vadd.f32 %v1190_v32, %v1119_v35 }
0x1737   :  { %1128 = vst [vmem:[%s1770_s8] sm:$0xff] %v1120_v36 }
0x1738   :  { %1442 = dma.done.wait [#allocation3], 32  }
0x1739   :  { %1443 = vsyncadd [#allocation3], 4294967264 }
0x173a   :  { %1444 = dma.done.wait [#allocation5], 32  }
0x173b   :  { %1445 = vsyncadd [#allocation5], 4294967264 }
0x173c   :  { %1160 = vsyncpa [#allocation3], 1 }
0x173d   :  { %1161 = vsyncpa [#allocation5], 1 }

</bundles_post_ra>
